<compile_context>
chip_gen: v5e
topology: v5e:2x2
jax: 0.10.0
libtpu: 0.0.40
codegen_flags: <defaults>
</compile_context>

<pallas_src>
import jax
import jax.numpy as jnp
from jax import lax
from jax.experimental import pallas as pl
from jax.experimental.pallas import tpu as pltpu

# ----------------------------- small config -----------------------------
BERT_OUT_DIM = 32
INTENT_MLP   = (32, 16, 8)      # RMCL_intent_MLP; last entry == num_intent
NUM_INTENT   = INTENT_MLP[-1]
ID_EMBD      = 16
PREDICT_MLP  = (64, 32, 1)      # RMCL_predict_MLP
VOCAB        = 100
BS, SEQ_LEN, WORD_LEN = 2, 4, 8
USER_NUM, ITEM_NUM = 10, 12

D = BERT_OUT_DIM
H1, H2, K = INTENT_MLP
ID = ID_EMBD
P1, P2, P3 = PREDICT_MLP
LANES = 128
OUT_ROWS = 8


# ------------------------- packed parameter layout -----------------------
def _round8(n):
    return ((n + 7) // 8) * 8


# Groups: entries inside a group stack on consecutive rows (no per-entry 8-row
# padding); each group starts on an 8-row boundary.  Every entry lives at lane
# offset 0 of the single 128-lane slab, so kernel-side P() slices are cheap
# static loads.
_PARAM_GROUPS = [
    [("W1",   (2 * D, 2 * H1))],          # block_diag(uW1, iW1)
    [("W2",   (2 * H1, 2 * H2))],         # block_diag(uW2, iW2)
    [("W3",   (2 * H2, 2 * K))],          # block_diag(uW3, iW3)
    [("IV",   (2 * K, 2 * D))],           # block_diag(u_iv, i_iv)
    [("IVI",  (2 * K, D))],               # [0; i_iv] -> lane-0 aligned i_agg
    [("PW1A", (D, P1)),                   # pW1 row-blocks (split predict MLP)
     ("PW1B", (D, P1)),
     ("PW1C", (2 * ID, P1))],
    [("PW2",  (P1, P2))],
    # coalesced 8-row region: all 1-row tensors
    [("B1", (1, 2 * H1)), ("B2", (1, 2 * H2)), ("B3", (1, 2 * K)),
     ("PB1", (1, P1)), ("PB2", (1, P2)), ("PB3", (1, P3)), ("PW3T", (P3, P2))],
    # coalesced 8-row region: constant pooling + lane-scatter matrices
    [("POOL", (BS, BS * SEQ_LEN)), ("SCAT", (BS, LANES))],
]


def _build_layout(groups):
    layout, off = {}, 0
    for group in groups:
        g0 = off
        for name, (r, c) in group:
            assert c <= LANES
            layout[name] = (off, r, c)
            off += r
        off = g0 + _round8(off - g0)
    return layout, off


PARAM_LAYOUT, PARAM_ROWS = _build_layout(_PARAM_GROUPS)


# ------------------------------ Pallas kernel ----------------------------
def rmcl_kernel(rev_ref, id_ref, p_ref, out_ref):
    f32, bf16 = jnp.float32, jnp.bfloat16
    B = BS

    def P(name):                              # static slab slice -> bf16 array
        r0, r, c = PARAM_LAYOUT[name]
        return p_ref[r0:r0 + r, 0:c]

    def Pf(name):
        return P(name).astype(f32)

    def dotb(a, b):                           # bf16 MXU matmul, f32 accumulate
        return jnp.dot(a.astype(bf16), b.astype(bf16),
                       preferred_element_type=f32)

    def dotb_t(a, b):                         # a @ b.T, bf16 in / f32 out
        return lax.dot_general(a.astype(bf16), b.astype(bf16),
                               (((1,), (1,)), ((), ())),
                               preferred_element_type=f32)

    def dot_t32(a, b):                        # f32 a @ b.T (final prediction)
        return lax.dot_general(a, b, (((1,), (1,)), ((), ())),
                               preferred_element_type=f32)

    def halves_mask(shape, h):                # lane-iota mask: True on [0, h)
        lane = lax.broadcasted_iota(jnp.int32, shape, 1)
        return lane < h

    def hsum(x, m):                           # masked lane-sum
        return jnp.sum(jnp.where(m, x, 0.0), axis=1, keepdims=True)

    def hmax(x, m):                           # masked lane-max
        return jnp.max(jnp.where(m, x, -jnp.inf), axis=1, keepdims=True)

    def softmax_halves(x, h):                 # per-branch softmax, in place
        left = halves_mask(x.shape, h)
        m = jnp.where(left, hmax(x, left), hmax(x, ~left))
        e = jnp.exp(x - m)
        s = jnp.where(left, hsum(e, left), hsum(e, ~left))
        # NOTE: approx reciprocal (~2^-12 rel err) -- fine for inference.
        return e * pl.reciprocal(s, approx=True)

    def log_softmax_halves(x, h):             # per-branch log-softmax
        left = halves_mask(x.shape, h)
        m = jnp.where(left, hmax(x, left), hmax(x, ~left))
        z = x - m
        e = jnp.exp(z)
        s = jnp.where(left, hsum(e, left), hsum(e, ~left))
        return z - jnp.log(s)

    # ---- mean over the review axis (torch.mean(dim=1)) as one pooling matmul
    rev_cat = dotb(P("POOL"), rev_ref[...])            # (B, 2D) = [u_rev | i_rev]

    # ---- fused (block-diagonal) user/item intent generators ----
    h = softmax_halves(dotb(rev_cat, P("W1")) + Pf("B1"), H1)
    h = softmax_halves(dotb(h, P("W2")) + Pf("B2"), H2)
    gen_cat = softmax_halves(dotb(h, P("W3")) + Pf("B3"), K)    # (B, 2K)

    agg_cat = dotb(gen_cat, P("IV"))                   # (B, 2D) = [u_agg | i_agg]
    i_agg = dotb(gen_cat, P("IVI"))                    # (B, D), lane-0 aligned
    u_agg = agg_cat[:, :D]                             # offset-0 view, no relayout

    # ---- prediction MLP (3 linears, no activation) as split matmuls ----
    id_cat = id_ref[...]                               # (B, 2*ID) = [uemb | iemb]
    h = (dotb(u_agg * i_agg, P("PW1A"))
         + dotb(u_agg - i_agg, P("PW1B"))
         + dotb(id_cat, P("PW1C"))
         + Pf("PB1"))                                  # (B, P1)
    h = dotb(h, P("PW2")) + Pf("PB2")                  # (B, P2)
    pred_nb = dot_t32(Pf("PW3T"), h)                   # (1, B), bias added below

    # ---- auxiliary losses (all cross-half math via masked reductions) ----
    leftD = halves_mask(agg_cat.shape, D)
    pr = agg_cat * rev_cat
    a2 = agg_cat * agg_cat
    r2 = rev_cat * rev_cat
    eps2 = jnp.float32(1e-16)                          # == torch eps 1e-8 on norms

    def cos_half(mask):
        return (hsum(pr, mask)
                * lax.rsqrt(jnp.maximum(hsum(a2, mask), eps2))
                * lax.rsqrt(jnp.maximum(hsum(r2, mask), eps2)))

    l_sim_sum = jnp.sum(cos_half(leftD) + cos_half(~leftD), keepdims=True)

    # L_ind: user intent-vector Gram only (matches the PyTorch reference).
    iv_r0 = PARAM_LAYOUT["IV"][0]
    u_iv = p_ref[iv_r0:iv_r0 + K, 0:D]                 # (K, D) bf16
    gram = dotb_t(u_iv, u_iv)                          # (K, K) f32
    l_ind_sum = jnp.sum(gram * gram, keepdims=True)

    # L_cl: sum(gen * log_softmax(rev @ iv^T)); no minus sign / no mean,
    # exactly as in the reference.
    scores = dotb_t(rev_cat, P("IV"))                  # (B, 2K)
    l_cl_sum = jnp.sum(gen_cat * log_softmax_halves(scores, K), keepdims=True)

    total = (jax.nn.sigmoid(l_sim_sum) + jax.nn.sigmoid(l_ind_sum)
             + jax.nn.sigmoid(l_cl_sum))               # (1, 1)

    # ---- single lane-dense (8, 128) output store ----
    pred128 = jnp.dot(pred_nb, Pf("SCAT"),
                      preferred_element_type=f32)      # (1, 128): pred_b at lane b
    lane = lax.broadcasted_iota(jnp.int32, (1, LANES), 1)
    row = (pred128
           + jnp.where(lane < B, Pf("PB3"), 0.0)       # bias only on pred lanes
           + jnp.where(lane == B, total, 0.0))         # loss at lane BS
    rowi = lax.broadcasted_iota(jnp.int32, (OUT_ROWS, LANES), 0)
    out_ref[...] = jnp.where(rowi == 0, row, jnp.float32(0.0))


# ------------------------------ wrapper ----------------------------------
def rmcl_forward(rev_pair, id_pair, param_slab):
    vspec = pl.BlockSpec(memory_space=pltpu.MemorySpace.VMEM)
    out = pl.pallas_call(
        rmcl_kernel,
        out_shape=jax.ShapeDtypeStruct((OUT_ROWS, LANES), jnp.float32),
        in_specs=[vspec, vspec, vspec],
        out_specs=vspec,
    )(rev_pair, id_pair, param_slab)
    pred = out[0, 0:BS]           # (BS,)
    loss = out[0, BS:BS + 1]      # (1,)
    return pred, loss


# --------------------------- parameter packing ----------------------------
def _block_diag(a, b):
    ra, ca = a.shape
    rb, cb = b.shape
    top = jnp.concatenate([a, jnp.zeros((ra, cb), a.dtype)], axis=1)
    bot = jnp.concatenate([jnp.zeros((rb, ca), b.dtype), b], axis=1)
    return jnp.concatenate([top, bot], axis=0)


def pack_params(kernel_params):
    (uW1, ub1, uW2, ub2, uW3, ub3,
     iW1, ib1, iW2, ib2, iW3, ib3,
     u_iv, i_iv,
     pW1, pb1, pW2, pb2, pW3, pb3) = kernel_params

    pool = jnp.kron(jnp.eye(BS, dtype=jnp.float32),
                    jnp.full((1, SEQ_LEN), 1.0 / SEQ_LEN, jnp.float32))
    scat = jnp.eye(BS, LANES, dtype=jnp.float32)       # SCAT[b, b] = 1

    fused = {
        "W1": _block_diag(uW1, iW1), "B1": jnp.concatenate([ub1, ib1], axis=1),
        "W2": _block_diag(uW2, iW2), "B2": jnp.concatenate([ub2, ib2], axis=1),
        "W3": _block_diag(uW3, iW3), "B3": jnp.concatenate([ub3, ib3], axis=1),
        "IV": _block_diag(u_iv, i_iv),
        "IVI": jnp.concatenate([jnp.zeros((K, D), jnp.float32), i_iv], axis=0),
        "PW1A": pW1[:D], "PW1B": pW1[D:2 * D], "PW1C": pW1[2 * D:],
        "PB1": pb1, "PW2": pW2, "PB2": pb2, "PW3T": pW3.T, "PB3": pb3,
        "POOL": pool, "SCAT": scat,
    }
    slab = jnp.zeros((PARAM_ROWS, LANES), jnp.float32)
    for name, (r0, r, c) in PARAM_LAYOUT.items():
        v = fused[name]
        assert v.shape == (r, c), (name, v.shape, (r, c))
        slab = slab.at[r0:r0 + r, 0:c].set(v)
    # bf16 slab: halves the per-call weight DMA; matmuls accumulate in f32.
    return slab.astype(jnp.bfloat16)


# --------------------------- parameter setup ------------------------------
def make_params(key):
    ks = iter(jax.random.split(key, 64))

    def lin(din, dout, scale=0.1):
        W = scale * jax.random.normal(next(ks), (din, dout), jnp.float32)
        b = scale * jax.random.normal(next(ks), (1, dout), jnp.float32)
        return W, b

    # intent generators (user / item)
    u_mlp = sum((lin(D, H1), lin(H1, H2), lin(H2, K)), ())
    i_mlp = sum((lin(D, H1), lin(H1, H2), lin(H2, K)), ())
    # intent vectors (torch.randn equivalent)
    u_iv = jax.random.normal(next(ks), (K, D), jnp.float32)
    i_iv = jax.random.normal(next(ks), (K, D), jnp.float32)
    # predict layer
    p_mlp = sum((lin(2 * D + 2 * ID, P1), lin(P1, P2), lin(P2, P3)), ())

    kernel_params = tuple(u_mlp) + tuple(i_mlp) + (u_iv, i_iv) + tuple(p_mlp)

    # glue params (plain JAX): BERT-stub + id embedding tables
    word_emb = 0.1 * jax.random.normal(next(ks), (VOCAB, D), jnp.float32)
    pool_W = 0.1 * jax.random.normal(next(ks), (D, D), jnp.float32)
    pool_b = 0.1 * jax.random.normal(next(ks), (D,), jnp.float32)
    user_emb_tbl = 0.1 * jax.random.normal(next(ks), (USER_NUM, ID), jnp.float32)
    item_emb_tbl = 0.1 * jax.random.normal(next(ks), (ITEM_NUM, ID), jnp.float32)
    glue = dict(word_emb=word_emb, pool_W=pool_W, pool_b=pool_b,
                user_emb_tbl=user_emb_tbl, item_emb_tbl=item_emb_tbl)
    return kernel_params, glue


def bert_stub(tokens, glue):
    # tokens: (B*S, W) int32 -> pooled (B*S, D); deterministic BERT replacement.
    emb = jnp.take(glue["word_emb"], tokens, axis=0)        # (B*S, W, D)
    pooled = jnp.tanh(jnp.mean(emb, axis=1) @ glue["pool_W"] + glue["pool_b"])
    return pooled


def rmcl(user_review, item_review, uid, iid, u_iid_seq, i_uid_seq,
         param_slab, glue):
    bs, seq_len, word_len = user_review.shape
    u_tok = user_review.astype(jnp.int32).reshape(bs * seq_len, word_len)
    i_tok = item_review.astype(jnp.int32).reshape(bs * seq_len, word_len)
    u_rev = bert_stub(u_tok, glue)                            # (B*S, D)
    i_rev = bert_stub(i_tok, glue)                            # (B*S, D)
    u_id = jnp.take(glue["user_emb_tbl"], uid, axis=0)        # (B, ID)
    i_id = jnp.take(glue["item_emb_tbl"], iid, axis=0)        # (B, ID)
    # Two tiny contiguous kernel inputs (no padded HBM activation slab).
    rev_pair = jnp.concatenate([u_rev, i_rev], axis=1).astype(jnp.bfloat16)
    id_pair = jnp.concatenate([u_id, i_id], axis=1).astype(jnp.bfloat16)
    return rmcl_forward(rev_pair, id_pair, param_slab)


# --------------------------------- main ----------------------------------
if __name__ == "__main__":
    key = jax.random.PRNGKey(0)
    kp, kd = jax.random.split(key)
    kernel_params, glue = make_params(kp)
    param_slab = pack_params(kernel_params)   # packed once, reused every call

    k1, k2, k3, k4, k5, k6 = jax.random.split(kd, 6)
    user_review = jax.random.randint(k1, (BS, SEQ_LEN, WORD_LEN), 0, VOCAB)
    item_review = jax.random.randint(k2, (BS, SEQ_LEN, WORD_LEN), 0, VOCAB)
    uid = jax.random.randint(k3, (BS,), 0, USER_NUM)
    iid = jax.random.randint(k4, (BS,), 0, ITEM_NUM)
    u_iid_seq = jax.random.randint(k5, (BS, SEQ_LEN), 0, ITEM_NUM)  # unused (as in ref)
    i_uid_seq = jax.random.randint(k6, (BS, SEQ_LEN), 0, USER_NUM)  # unused (as in ref)

    prediction, L = rmcl(user_review, item_review, uid, iid,
                         u_iid_seq, i_uid_seq, param_slab, glue)
    jax.block_until_ready((prediction, L))
    assert prediction.shape == (BS,) and L.shape == (1,)
    assert bool(jnp.all(jnp.isfinite(prediction))) and bool(jnp.isfinite(L[0]))
    print("KERNEL_OK")
</pallas_src>

<mosaic_0001>
module attributes {stable_mosaic.version = 11 : i64} {
  func.func @rmcl_kernel(%arg0: memref<8x64xbf16, #tpu.memory_space<vmem>>, %arg1: memref<2x32xbf16, #tpu.memory_space<vmem>>, %arg2: memref<368x128xbf16, #tpu.memory_space<vmem>>, %arg3: memref<8x128xf32, #tpu.memory_space<vmem>>) attributes {dimension_semantics = [], scalar_prefetch = 0 : i64, scratch_operands = 0 : i64, tpu.core_type = #tpu.core_type<tc>} {
    %c360 = arith.constant 360 : index
    %c0 = arith.constant 0 : index
    %0 = vector.load %arg2[%c360, %c0] : memref<368x128xbf16, #tpu.memory_space<vmem>>, vector<2x8xbf16>
    %c0_0 = arith.constant 0 : index
    %c0_1 = arith.constant 0 : index
    %1 = vector.load %arg0[%c0_0, %c0_1] : memref<8x64xbf16, #tpu.memory_space<vmem>>, vector<8x64xbf16>
    %cst = arith.constant dense<0.000000e+00> : vector<2x64xf32>
    %2 = tpu.matmul %0, %1, %cst {dimension_numbers = #tpu.dot_dimension_numbers<[1], [0], [0], [1], [0, 0, 1, 1], [], []>} : vector<2x8xbf16>, vector<8x64xbf16>, vector<2x64xf32> -> vector<2x64xf32>
    %c0_2 = arith.constant 0 : index
    %c0_3 = arith.constant 0 : index
    %3 = vector.load %arg2[%c0_2, %c0_3] : memref<368x128xbf16, #tpu.memory_space<vmem>>, vector<64x64xbf16>
    %4 = arith.truncf %2 : vector<2x64xf32> to vector<2x64xbf16>
    %cst_4 = arith.constant dense<0.000000e+00> : vector<2x64xf32>
    %5 = tpu.matmul %4, %3, %cst_4 {dimension_numbers = #tpu.dot_dimension_numbers<[1], [0], [0], [1], [0, 0, 1, 1], [], []>} : vector<2x64xbf16>, vector<64x64xbf16>, vector<2x64xf32> -> vector<2x64xf32>
    %c352 = arith.constant 352 : index
    %c0_5 = arith.constant 0 : index
    %6 = vector.load %arg2[%c352, %c0_5] : memref<368x128xbf16, #tpu.memory_space<vmem>>, vector<1x64xbf16>
    %7 = arith.extf %6 : vector<1x64xbf16> to vector<1x64xf32>
    %8 = vector.broadcast %7 : vector<1x64xf32> to vector<2x64xf32>
    %9 = arith.addf %5, %8 : vector<2x64xf32>
    %10 = tpu.iota {dimensions = array<i32: 1>} : vector<2x64xi32>
    %c32_i32 = arith.constant 32 : i32
    %11 = vector.broadcast %c32_i32 : i32 to vector<2x64xi32>
    %12 = arith.cmpi slt, %10, %11 : vector<2x64xi32>
    %cst_6 = arith.constant 0xFF800000 : f32
    %13 = vector.broadcast %cst_6 : f32 to vector<2x64xf32>
    %14 = arith.select %12, %9, %13 : vector<2x64xi1>, vector<2x64xf32>
    %cst_7 = arith.constant dense<0xFF800000> : vector<2xf32>
    %15 = vector.multi_reduction <maximumf>, %14, %cst_7 [1] : vector<2x64xf32> to vector<2xf32>
    %16 = vector.shape_cast %15 : vector<2xf32> to vector<2x1xf32>
    %cst_8 = arith.constant dense<true> : vector<2x64xi1>
    %17 = arith.xori %12, %cst_8 : vector<2x64xi1>
    %cst_9 = arith.constant 0xFF800000 : f32
    %18 = vector.broadcast %cst_9 : f32 to vector<2x64xf32>
    %19 = arith.select %17, %9, %18 : vector<2x64xi1>, vector<2x64xf32>
    %cst_10 = arith.constant dense<0xFF800000> : vector<2xf32>
    %20 = vector.multi_reduction <maximumf>, %19, %cst_10 [1] : vector<2x64xf32> to vector<2xf32>
    %21 = vector.shape_cast %20 : vector<2xf32> to vector<2x1xf32>
    %22 = vector.shape_cast %16 : vector<2x1xf32> to vector<2x1xf32>
    %23 = vector.broadcast %22 : vector<2x1xf32> to vector<2x64xf32>
    %24 = vector.shape_cast %21 : vector<2x1xf32> to vector<2x1xf32>
    %25 = vector.broadcast %24 : vector<2x1xf32> to vector<2x64xf32>
    %26 = arith.select %12, %23, %25 : vector<2x64xi1>, vector<2x64xf32>
    %27 = arith.subf %9, %26 : vector<2x64xf32>
    %28 = math.exp %27 : vector<2x64xf32>
    %cst_11 = arith.constant 0.000000e+00 : f32
    %29 = vector.broadcast %cst_11 : f32 to vector<2x64xf32>
    %30 = arith.select %12, %28, %29 : vector<2x64xi1>, vector<2x64xf32>
    %cst_12 = arith.constant dense<0.000000e+00> : vector<2xf32>
    %31 = vector.multi_reduction <add>, %30, %cst_12 [1] : vector<2x64xf32> to vector<2xf32>
    %32 = vector.shape_cast %31 : vector<2xf32> to vector<2x1xf32>
    %cst_13 = arith.constant dense<true> : vector<2x64xi1>
    %33 = arith.xori %12, %cst_13 : vector<2x64xi1>
    %cst_14 = arith.constant 0.000000e+00 : f32
    %34 = vector.broadcast %cst_14 : f32 to vector<2x64xf32>
    %35 = arith.select %33, %28, %34 : vector<2x64xi1>, vector<2x64xf32>
    %cst_15 = arith.constant dense<0.000000e+00> : vector<2xf32>
    %36 = vector.multi_reduction <add>, %35, %cst_15 [1] : vector<2x64xf32> to vector<2xf32>
    %37 = vector.shape_cast %36 : vector<2xf32> to vector<2x1xf32>
    %38 = vector.shape_cast %32 : vector<2x1xf32> to vector<2x1xf32>
    %39 = vector.broadcast %38 : vector<2x1xf32> to vector<2x64xf32>
    %40 = vector.shape_cast %37 : vector<2x1xf32> to vector<2x1xf32>
    %41 = vector.broadcast %40 : vector<2x1xf32> to vector<2x64xf32>
    %42 = arith.select %12, %39, %41 : vector<2x64xi1>, vector<2x64xf32>
    %43 = tpu.reciprocal %42 {approx = true} : vector<2x64xf32> -> vector<2x64xf32>
    %44 = arith.mulf %28, %43 : vector<2x64xf32>
    %c64 = arith.constant 64 : index
    %c0_16 = arith.constant 0 : index
    %45 = vector.load %arg2[%c64, %c0_16] : memref<368x128xbf16, #tpu.memory_space<vmem>>, vector<64x32xbf16>
    %46 = arith.truncf %44 : vector<2x64xf32> to vector<2x64xbf16>
    %cst_17 = arith.constant dense<0.000000e+00> : vector<2x32xf32>
    %47 = tpu.matmul %46, %45, %cst_17 {dimension_numbers = #tpu.dot_dimension_numbers<[1], [0], [0], [1], [0, 0, 1, 1], [], []>} : vector<2x64xbf16>, vector<64x32xbf16>, vector<2x32xf32> -> vector<2x32xf32>
    %c353 = arith.constant 353 : index
    %c0_18 = arith.constant 0 : index
    %48 = vector.load %arg2[%c353, %c0_18] : memref<368x128xbf16, #tpu.memory_space<vmem>>, vector<1x32xbf16>
    %49 = arith.extf %48 : vector<1x32xbf16> to vector<1x32xf32>
    %50 = vector.broadcast %49 : vector<1x32xf32> to vector<2x32xf32>
    %51 = arith.addf %47, %50 : vector<2x32xf32>
    %52 = tpu.iota {dimensions = array<i32: 1>} : vector<2x32xi32>
    %c16_i32 = arith.constant 16 : i32
    %53 = vector.broadcast %c16_i32 : i32 to vector<2x32xi32>
    %54 = arith.cmpi slt, %52, %53 : vector<2x32xi32>
    %cst_19 = arith.constant 0xFF800000 : f32
    %55 = vector.broadcast %cst_19 : f32 to vector<2x32xf32>
    %56 = arith.select %54, %51, %55 : vector<2x32xi1>, vector<2x32xf32>
    %cst_20 = arith.constant dense<0xFF800000> : vector<2xf32>
    %57 = vector.multi_reduction <maximumf>, %56, %cst_20 [1] : vector<2x32xf32> to vector<2xf32>
    %58 = vector.shape_cast %57 : vector<2xf32> to vector<2x1xf32>
    %cst_21 = arith.constant dense<true> : vector<2x32xi1>
    %59 = arith.xori %54, %cst_21 : vector<2x32xi1>
    %cst_22 = arith.constant 0xFF800000 : f32
    %60 = vector.broadcast %cst_22 : f32 to vector<2x32xf32>
    %61 = arith.select %59, %51, %60 : vector<2x32xi1>, vector<2x32xf32>
    %cst_23 = arith.constant dense<0xFF800000> : vector<2xf32>
    %62 = vector.multi_reduction <maximumf>, %61, %cst_23 [1] : vector<2x32xf32> to vector<2xf32>
    %63 = vector.shape_cast %62 : vector<2xf32> to vector<2x1xf32>
    %64 = vector.shape_cast %58 : vector<2x1xf32> to vector<2x1xf32>
    %65 = vector.broadcast %64 : vector<2x1xf32> to vector<2x32xf32>
    %66 = vector.shape_cast %63 : vector<2x1xf32> to vector<2x1xf32>
    %67 = vector.broadcast %66 : vector<2x1xf32> to vector<2x32xf32>
    %68 = arith.select %54, %65, %67 : vector<2x32xi1>, vector<2x32xf32>
    %69 = arith.subf %51, %68 : vector<2x32xf32>
    %70 = math.exp %69 : vector<2x32xf32>
    %cst_24 = arith.constant 0.000000e+00 : f32
    %71 = vector.broadcast %cst_24 : f32 to vector<2x32xf32>
    %72 = arith.select %54, %70, %71 : vector<2x32xi1>, vector<2x32xf32>
    %cst_25 = arith.constant dense<0.000000e+00> : vector<2xf32>
    %73 = vector.multi_reduction <add>, %72, %cst_25 [1] : vector<2x32xf32> to vector<2xf32>
    %74 = vector.shape_cast %73 : vector<2xf32> to vector<2x1xf32>
    %cst_26 = arith.constant dense<true> : vector<2x32xi1>
    %75 = arith.xori %54, %cst_26 : vector<2x32xi1>
    %cst_27 = arith.constant 0.000000e+00 : f32
    %76 = vector.broadcast %cst_27 : f32 to vector<2x32xf32>
    %77 = arith.select %75, %70, %76 : vector<2x32xi1>, vector<2x32xf32>
    %cst_28 = arith.constant dense<0.000000e+00> : vector<2xf32>
    %78 = vector.multi_reduction <add>, %77, %cst_28 [1] : vector<2x32xf32> to vector<2xf32>
    %79 = vector.shape_cast %78 : vector<2xf32> to vector<2x1xf32>
    %80 = vector.shape_cast %74 : vector<2x1xf32> to vector<2x1xf32>
    %81 = vector.broadcast %80 : vector<2x1xf32> to vector<2x32xf32>
    %82 = vector.shape_cast %79 : vector<2x1xf32> to vector<2x1xf32>
    %83 = vector.broadcast %82 : vector<2x1xf32> to vector<2x32xf32>
    %84 = arith.select %54, %81, %83 : vector<2x32xi1>, vector<2x32xf32>
    %85 = tpu.reciprocal %84 {approx = true} : vector<2x32xf32> -> vector<2x32xf32>
    %86 = arith.mulf %70, %85 : vector<2x32xf32>
    %c128 = arith.constant 128 : index
    %c0_29 = arith.constant 0 : index
    %87 = vector.load %arg2[%c128, %c0_29] : memref<368x128xbf16, #tpu.memory_space<vmem>>, vector<32x16xbf16>
    %88 = arith.truncf %86 : vector<2x32xf32> to vector<2x32xbf16>
    %cst_30 = arith.constant dense<0.000000e+00> : vector<2x16xf32>
    %89 = tpu.matmul %88, %87, %cst_30 {dimension_numbers = #tpu.dot_dimension_numbers<[1], [0], [0], [1], [0, 0, 1, 1], [], []>} : vector<2x32xbf16>, vector<32x16xbf16>, vector<2x16xf32> -> vector<2x16xf32>
    %c354 = arith.constant 354 : index
    %c0_31 = arith.constant 0 : index
    %90 = vector.load %arg2[%c354, %c0_31] : memref<368x128xbf16, #tpu.memory_space<vmem>>, vector<1x16xbf16>
    %91 = arith.extf %90 : vector<1x16xbf16> to vector<1x16xf32>
    %92 = vector.broadcast %91 : vector<1x16xf32> to vector<2x16xf32>
    %93 = arith.addf %89, %92 : vector<2x16xf32>
    %94 = tpu.iota {dimensions = array<i32: 1>} : vector<2x16xi32>
    %c8_i32 = arith.constant 8 : i32
    %95 = vector.broadcast %c8_i32 : i32 to vector<2x16xi32>
    %96 = arith.cmpi slt, %94, %95 : vector<2x16xi32>
    %cst_32 = arith.constant 0xFF800000 : f32
    %97 = vector.broadcast %cst_32 : f32 to vector<2x16xf32>
    %98 = arith.select %96, %93, %97 : vector<2x16xi1>, vector<2x16xf32>
    %cst_33 = arith.constant dense<0xFF800000> : vector<2xf32>
    %99 = vector.multi_reduction <maximumf>, %98, %cst_33 [1] : vector<2x16xf32> to vector<2xf32>
    %100 = vector.shape_cast %99 : vector<2xf32> to vector<2x1xf32>
    %cst_34 = arith.constant dense<true> : vector<2x16xi1>
    %101 = arith.xori %96, %cst_34 : vector<2x16xi1>
    %cst_35 = arith.constant 0xFF800000 : f32
    %102 = vector.broadcast %cst_35 : f32 to vector<2x16xf32>
    %103 = arith.select %101, %93, %102 : vector<2x16xi1>, vector<2x16xf32>
    %cst_36 = arith.constant dense<0xFF800000> : vector<2xf32>
    %104 = vector.multi_reduction <maximumf>, %103, %cst_36 [1] : vector<2x16xf32> to vector<2xf32>
    %105 = vector.shape_cast %104 : vector<2xf32> to vector<2x1xf32>
    %106 = vector.shape_cast %100 : vector<2x1xf32> to vector<2x1xf32>
    %107 = vector.broadcast %106 : vector<2x1xf32> to vector<2x16xf32>
    %108 = vector.shape_cast %105 : vector<2x1xf32> to vector<2x1xf32>
    %109 = vector.broadcast %108 : vector<2x1xf32> to vector<2x16xf32>
    %110 = arith.select %96, %107, %109 : vector<2x16xi1>, vector<2x16xf32>
    %111 = arith.subf %93, %110 : vector<2x16xf32>
    %112 = math.exp %111 : vector<2x16xf32>
    %cst_37 = arith.constant 0.000000e+00 : f32
    %113 = vector.broadcast %cst_37 : f32 to vector<2x16xf32>
    %114 = arith.select %96, %112, %113 : vector<2x16xi1>, vector<2x16xf32>
    %cst_38 = arith.constant dense<0.000000e+00> : vector<2xf32>
    %115 = vector.multi_reduction <add>, %114, %cst_38 [1] : vector<2x16xf32> to vector<2xf32>
    %116 = vector.shape_cast %115 : vector<2xf32> to vector<2x1xf32>
    %cst_39 = arith.constant dense<true> : vector<2x16xi1>
    %117 = arith.xori %96, %cst_39 : vector<2x16xi1>
    %cst_40 = arith.constant 0.000000e+00 : f32
    %118 = vector.broadcast %cst_40 : f32 to vector<2x16xf32>
    %119 = arith.select %117, %112, %118 : vector<2x16xi1>, vector<2x16xf32>
    %cst_41 = arith.constant dense<0.000000e+00> : vector<2xf32>
    %120 = vector.multi_reduction <add>, %119, %cst_41 [1] : vector<2x16xf32> to vector<2xf32>
    %121 = vector.shape_cast %120 : vector<2xf32> to vector<2x1xf32>
    %122 = vector.shape_cast %116 : vector<2x1xf32> to vector<2x1xf32>
    %123 = vector.broadcast %122 : vector<2x1xf32> to vector<2x16xf32>
    %124 = vector.shape_cast %121 : vector<2x1xf32> to vector<2x1xf32>
    %125 = vector.broadcast %124 : vector<2x1xf32> to vector<2x16xf32>
    %126 = arith.select %96, %123, %125 : vector<2x16xi1>, vector<2x16xf32>
    %127 = tpu.reciprocal %126 {approx = true} : vector<2x16xf32> -> vector<2x16xf32>
    %128 = arith.mulf %112, %127 : vector<2x16xf32>
    %c160 = arith.constant 160 : index
    %c0_42 = arith.constant 0 : index
    %129 = vector.load %arg2[%c160, %c0_42] : memref<368x128xbf16, #tpu.memory_space<vmem>>, vector<16x64xbf16>
    %130 = arith.truncf %128 : vector<2x16xf32> to vector<2x16xbf16>
    %cst_43 = arith.constant dense<0.000000e+00> : vector<2x64xf32>
    %131 = tpu.matmul %130, %129, %cst_43 {dimension_numbers = #tpu.dot_dimension_numbers<[1], [0], [0], [1], [0, 0, 1, 1], [], []>} : vector<2x16xbf16>, vector<16x64xbf16>, vector<2x64xf32> -> vector<2x64xf32>
    %c176 = arith.constant 176 : index
    %c0_44 = arith.constant 0 : index
    %132 = vector.load %arg2[%c176, %c0_44] : memref<368x128xbf16, #tpu.memory_space<vmem>>, vector<16x32xbf16>
    %133 = arith.truncf %128 : vector<2x16xf32> to vector<2x16xbf16>
    %cst_45 = arith.constant dense<0.000000e+00> : vector<2x32xf32>
    %134 = tpu.matmul %133, %132, %cst_45 {dimension_numbers = #tpu.dot_dimension_numbers<[1], [0], [0], [1], [0, 0, 1, 1], [], []>} : vector<2x16xbf16>, vector<16x32xbf16>, vector<2x32xf32> -> vector<2x32xf32>
    %135 = vector.extract_strided_slice %131 {offsets = [0, 0], sizes = [2, 32], strides = [1, 1]} : vector<2x64xf32> to vector<2x32xf32>
    %c0_46 = arith.constant 0 : index
    %c0_47 = arith.constant 0 : index
    %136 = vector.load %arg1[%c0_46, %c0_47] : memref<2x32xbf16, #tpu.memory_space<vmem>>, vector<2x32xbf16>
    %137 = arith.mulf %135, %134 : vector<2x32xf32>
    %c192 = arith.constant 192 : index
    %c0_48 = arith.constant 0 : index
    %138 = vector.load %arg2[%c192, %c0_48] : memref<368x128xbf16, #tpu.memory_space<vmem>>, vector<32x64xbf16>
    %139 = arith.truncf %137 : vector<2x32xf32> to vector<2x32xbf16>
    %cst_49 = arith.constant dense<0.000000e+00> : vector<2x64xf32>
    %140 = tpu.matmul %139, %138, %cst_49 {dimension_numbers = #tpu.dot_dimension_numbers<[1], [0], [0], [1], [0, 0, 1, 1], [], []>} : vector<2x32xbf16>, vector<32x64xbf16>, vector<2x64xf32> -> vector<2x64xf32>
    %141 = arith.subf %135, %134 : vector<2x32xf32>
    %c224 = arith.constant 224 : index
    %c0_50 = arith.constant 0 : index
    %142 = vector.load %arg2[%c224, %c0_50] : memref<368x128xbf16, #tpu.memory_space<vmem>>, vector<32x64xbf16>
    %143 = arith.truncf %141 : vector<2x32xf32> to vector<2x32xbf16>
    %cst_51 = arith.constant dense<0.000000e+00> : vector<2x64xf32>
    %144 = tpu.matmul %143, %142, %cst_51 {dimension_numbers = #tpu.dot_dimension_numbers<[1], [0], [0], [1], [0, 0, 1, 1], [], []>} : vector<2x32xbf16>, vector<32x64xbf16>, vector<2x64xf32> -> vector<2x64xf32>
    %145 = arith.addf %140, %144 : vector<2x64xf32>
    %c256 = arith.constant 256 : index
    %c0_52 = arith.constant 0 : index
    %146 = vector.load %arg2[%c256, %c0_52] : memref<368x128xbf16, #tpu.memory_space<vmem>>, vector<32x64xbf16>
    %cst_53 = arith.constant dense<0.000000e+00> : vector<2x64xf32>
    %147 = tpu.matmul %136, %146, %cst_53 {dimension_numbers = #tpu.dot_dimension_numbers<[1], [0], [0], [1], [0, 0, 1, 1], [], []>} : vector<2x32xbf16>, vector<32x64xbf16>, vector<2x64xf32> -> vector<2x64xf32>
    %148 = arith.addf %145, %147 : vector<2x64xf32>
    %c355 = arith.constant 355 : index
    %c0_54 = arith.constant 0 : index
    %149 = vector.load %arg2[%c355, %c0_54] : memref<368x128xbf16, #tpu.memory_space<vmem>>, vector<1x64xbf16>
    %150 = arith.extf %149 : vector<1x64xbf16> to vector<1x64xf32>
    %151 = vector.broadcast %150 : vector<1x64xf32> to vector<2x64xf32>
    %152 = arith.addf %148, %151 : vector<2x64xf32>
    %c288 = arith.constant 288 : index
    %c0_55 = arith.constant 0 : index
    %153 = vector.load %arg2[%c288, %c0_55] : memref<368x128xbf16, #tpu.memory_space<vmem>>, vector<64x32xbf16>
    %154 = arith.truncf %152 : vector<2x64xf32> to vector<2x64xbf16>
    %cst_56 = arith.constant dense<0.000000e+00> : vector<2x32xf32>
    %155 = tpu.matmul %154, %153, %cst_56 {dimension_numbers = #tpu.dot_dimension_numbers<[1], [0], [0], [1], [0, 0, 1, 1], [], []>} : vector<2x64xbf16>, vector<64x32xbf16>, vector<2x32xf32> -> vector<2x32xf32>
    %c356 = arith.constant 356 : index
    %c0_57 = arith.constant 0 : index
    %156 = vector.load %arg2[%c356, %c0_57] : memref<368x128xbf16, #tpu.memory_space<vmem>>, vector<1x32xbf16>
    %157 = arith.extf %156 : vector<1x32xbf16> to vector<1x32xf32>
    %158 = vector.broadcast %157 : vector<1x32xf32> to vector<2x32xf32>
    %159 = arith.addf %155, %158 : vector<2x32xf32>
    %c358 = arith.constant 358 : index
    %c0_58 = arith.constant 0 : index
    %160 = vector.load %arg2[%c358, %c0_58] : memref<368x128xbf16, #tpu.memory_space<vmem>>, vector<1x32xbf16>
    %161 = arith.extf %160 : vector<1x32xbf16> to vector<1x32xf32>
    %cst_59 = arith.constant dense<0.000000e+00> : vector<1x2xf32>
    %162 = tpu.matmul %161, %159, %cst_59 {dimension_numbers = #tpu.dot_dimension_numbers<[1], [1], [0], [0], [0, 0, 1, 0], [], []>} : vector<1x32xf32>, vector<2x32xf32>, vector<1x2xf32> -> vector<1x2xf32>
    %163 = tpu.iota {dimensions = array<i32: 1>} : vector<2x64xi32>
    %c32_i32_60 = arith.constant 32 : i32
    %164 = vector.broadcast %c32_i32_60 : i32 to vector<2x64xi32>
    %165 = arith.cmpi slt, %163, %164 : vector<2x64xi32>
    %166 = arith.mulf %131, %2 : vector<2x64xf32>
    %167 = arith.mulf %131, %131 : vector<2x64xf32>
    %168 = arith.mulf %2, %2 : vector<2x64xf32>
    %cst_61 = arith.constant 0.000000e+00 : f32
    %169 = vector.broadcast %cst_61 : f32 to vector<2x64xf32>
    %170 = arith.select %165, %166, %169 : vector<2x64xi1>, vector<2x64xf32>
    %cst_62 = arith.constant dense<0.000000e+00> : vector<2xf32>
    %171 = vector.multi_reduction <add>, %170, %cst_62 [1] : vector<2x64xf32> to vector<2xf32>
    %172 = vector.shape_cast %171 : vector<2xf32> to vector<2x1xf32>
    %cst_63 = arith.constant 0.000000e+00 : f32
    %173 = vector.broadcast %cst_63 : f32 to vector<2x64xf32>
    %174 = arith.select %165, %167, %173 : vector<2x64xi1>, vector<2x64xf32>
    %cst_64 = arith.constant dense<0.000000e+00> : vector<2xf32>
    %175 = vector.multi_reduction <add>, %174, %cst_64 [1] : vector<2x64xf32> to vector<2xf32>
    %176 = vector.shape_cast %175 : vector<2xf32> to vector<2x1xf32>
    %cst_65 = arith.constant 1.000000e-16 : f32
    %177 = vector.broadcast %cst_65 : f32 to vector<2x1xf32>
    %178 = arith.maximumf %176, %177 : vector<2x1xf32>
    %179 = math.rsqrt %178 : vector<2x1xf32>
    %180 = arith.mulf %172, %179 : vector<2x1xf32>
    %cst_66 = arith.constant 0.000000e+00 : f32
    %181 = vector.broadcast %cst_66 : f32 to vector<2x64xf32>
    %182 = arith.select %165, %168, %181 : vector<2x64xi1>, vector<2x64xf32>
    %cst_67 = arith.constant dense<0.000000e+00> : vector<2xf32>
    %183 = vector.multi_reduction <add>, %182, %cst_67 [1] : vector<2x64xf32> to vector<2xf32>
    %184 = vector.shape_cast %183 : vector<2xf32> to vector<2x1xf32>
    %cst_68 = arith.constant 1.000000e-16 : f32
    %185 = vector.broadcast %cst_68 : f32 to vector<2x1xf32>
    %186 = arith.maximumf %184, %185 : vector<2x1xf32>
    %187 = math.rsqrt %186 : vector<2x1xf32>
    %188 = arith.mulf %180, %187 : vector<2x1xf32>
    %cst_69 = arith.constant dense<true> : vector<2x64xi1>
    %189 = arith.xori %165, %cst_69 : vector<2x64xi1>
    %cst_70 = arith.constant 0.000000e+00 : f32
    %190 = vector.broadcast %cst_70 : f32 to vector<2x64xf32>
    %191 = arith.select %189, %166, %190 : vector<2x64xi1>, vector<2x64xf32>
    %cst_71 = arith.constant dense<0.000000e+00> : vector<2xf32>
    %192 = vector.multi_reduction <add>, %191, %cst_71 [1] : vector<2x64xf32> to vector<2xf32>
    %193 = vector.shape_cast %192 : vector<2xf32> to vector<2x1xf32>
    %cst_72 = arith.constant 0.000000e+00 : f32
    %194 = vector.broadcast %cst_72 : f32 to vector<2x64xf32>
    %195 = arith.select %189, %167, %194 : vector<2x64xi1>, vector<2x64xf32>
    %cst_73 = arith.constant dense<0.000000e+00> : vector<2xf32>
    %196 = vector.multi_reduction <add>, %195, %cst_73 [1] : vector<2x64xf32> to vector<2xf32>
    %197 = vector.shape_cast %196 : vector<2xf32> to vector<2x1xf32>
    %cst_74 = arith.constant 1.000000e-16 : f32
    %198 = vector.broadcast %cst_74 : f32 to vector<2x1xf32>
    %199 = arith.maximumf %197, %198 : vector<2x1xf32>
    %200 = math.rsqrt %199 : vector<2x1xf32>
    %201 = arith.mulf %193, %200 : vector<2x1xf32>
    %cst_75 = arith.constant 0.000000e+00 : f32
    %202 = vector.broadcast %cst_75 : f32 to vector<2x64xf32>
    %203 = arith.select %189, %168, %202 : vector<2x64xi1>, vector<2x64xf32>
    %cst_76 = arith.constant dense<0.000000e+00> : vector<2xf32>
    %204 = vector.multi_reduction <add>, %203, %cst_76 [1] : vector<2x64xf32> to vector<2xf32>
    %205 = vector.shape_cast %204 : vector<2xf32> to vector<2x1xf32>
    %cst_77 = arith.constant 1.000000e-16 : f32
    %206 = vector.broadcast %cst_77 : f32 to vector<2x1xf32>
    %207 = arith.maximumf %205, %206 : vector<2x1xf32>
    %208 = math.rsqrt %207 : vector<2x1xf32>
    %209 = arith.mulf %201, %208 : vector<2x1xf32>
    %210 = arith.addf %188, %209 : vector<2x1xf32>
    %211 = vector.shape_cast %210 : vector<2x1xf32> to vector<1x2x1xf32>
    %cst_78 = arith.constant dense<0.000000e+00> : vector<1xf32>
    %212 = vector.multi_reduction <add>, %211, %cst_78 [1, 2] : vector<1x2x1xf32> to vector<1xf32>
    %213 = vector.shape_cast %212 : vector<1xf32> to vector<1x1x1xf32>
    %214 = vector.extract %213[0, 0, 0] : f32 from vector<1x1x1xf32>
    %215 = vector.broadcast %214 : f32 to vector<1x1xf32>
    %c160_79 = arith.constant 160 : index
    %c0_80 = arith.constant 0 : index
    %216 = vector.load %arg2[%c160_79, %c0_80] : memref<368x128xbf16, #tpu.memory_space<vmem>>, vector<8x32xbf16>
    %cst_81 = arith.constant dense<0.000000e+00> : vector<8x8xf32>
    %217 = tpu.matmul %216, %216, %cst_81 {dimension_numbers = #tpu.dot_dimension_numbers<[1], [1], [0], [0], [0, 0, 1, 0], [], []>} : vector<8x32xbf16>, vector<8x32xbf16>, vector<8x8xf32> -> vector<8x8xf32>
    %218 = arith.mulf %217, %217 : vector<8x8xf32>
    %219 = vector.shape_cast %218 : vector<8x8xf32> to vector<1x8x8xf32>
    %cst_82 = arith.constant dense<0.000000e+00> : vector<1xf32>
    %220 = vector.multi_reduction <add>, %219, %cst_82 [1, 2] : vector<1x8x8xf32> to vector<1xf32>
    %221 = vector.shape_cast %220 : vector<1xf32> to vector<1x1x1xf32>
    %222 = vector.extract %221[0, 0, 0] : f32 from vector<1x1x1xf32>
    %223 = vector.broadcast %222 : f32 to vector<1x1xf32>
    %c160_83 = arith.constant 160 : index
    %c0_84 = arith.constant 0 : index
    %224 = vector.load %arg2[%c160_83, %c0_84] : memref<368x128xbf16, #tpu.memory_space<vmem>>, vector<16x64xbf16>
    %225 = arith.truncf %2 : vector<2x64xf32> to vector<2x64xbf16>
    %cst_85 = arith.constant dense<0.000000e+00> : vector<2x16xf32>
    %226 = tpu.matmul %225, %224, %cst_85 {dimension_numbers = #tpu.dot_dimension_numbers<[1], [1], [0], [0], [0, 0, 1, 0], [], []>} : vector<2x64xbf16>, vector<16x64xbf16>, vector<2x16xf32> -> vector<2x16xf32>
    %227 = tpu.iota {dimensions = array<i32: 1>} : vector<2x16xi32>
    %c8_i32_86 = arith.constant 8 : i32
    %228 = vector.broadcast %c8_i32_86 : i32 to vector<2x16xi32>
    %229 = arith.cmpi slt, %227, %228 : vector<2x16xi32>
    %cst_87 = arith.constant 0xFF800000 : f32
    %230 = vector.broadcast %cst_87 : f32 to vector<2x16xf32>
    %231 = arith.select %229, %226, %230 : vector<2x16xi1>, vector<2x16xf32>
    %cst_88 = arith.constant dense<0xFF800000> : vector<2xf32>
    %232 = vector.multi_reduction <maximumf>, %231, %cst_88 [1] : vector<2x16xf32> to vector<2xf32>
    %233 = vector.shape_cast %232 : vector<2xf32> to vector<2x1xf32>
    %cst_89 = arith.constant dense<true> : vector<2x16xi1>
    %234 = arith.xori %229, %cst_89 : vector<2x16xi1>
    %cst_90 = arith.constant 0xFF800000 : f32
    %235 = vector.broadcast %cst_90 : f32 to vector<2x16xf32>
    %236 = arith.select %234, %226, %235 : vector<2x16xi1>, vector<2x16xf32>
    %cst_91 = arith.constant dense<0xFF800000> : vector<2xf32>
    %237 = vector.multi_reduction <maximumf>, %236, %cst_91 [1] : vector<2x16xf32> to vector<2xf32>
    %238 = vector.shape_cast %237 : vector<2xf32> to vector<2x1xf32>
    %239 = vector.shape_cast %233 : vector<2x1xf32> to vector<2x1xf32>
    %240 = vector.broadcast %239 : vector<2x1xf32> to vector<2x16xf32>
    %241 = vector.shape_cast %238 : vector<2x1xf32> to vector<2x1xf32>
    %242 = vector.broadcast %241 : vector<2x1xf32> to vector<2x16xf32>
    %243 = arith.select %229, %240, %242 : vector<2x16xi1>, vector<2x16xf32>
    %244 = arith.subf %226, %243 : vector<2x16xf32>
    %245 = math.exp %244 : vector<2x16xf32>
    %cst_92 = arith.constant 0.000000e+00 : f32
    %246 = vector.broadcast %cst_92 : f32 to vector<2x16xf32>
    %247 = arith.select %229, %245, %246 : vector<2x16xi1>, vector<2x16xf32>
    %cst_93 = arith.constant dense<0.000000e+00> : vector<2xf32>
    %248 = vector.multi_reduction <add>, %247, %cst_93 [1] : vector<2x16xf32> to vector<2xf32>
    %249 = vector.shape_cast %248 : vector<2xf32> to vector<2x1xf32>
    %cst_94 = arith.constant dense<true> : vector<2x16xi1>
    %250 = arith.xori %229, %cst_94 : vector<2x16xi1>
    %cst_95 = arith.constant 0.000000e+00 : f32
    %251 = vector.broadcast %cst_95 : f32 to vector<2x16xf32>
    %252 = arith.select %250, %245, %251 : vector<2x16xi1>, vector<2x16xf32>
    %cst_96 = arith.constant dense<0.000000e+00> : vector<2xf32>
    %253 = vector.multi_reduction <add>, %252, %cst_96 [1] : vector<2x16xf32> to vector<2xf32>
    %254 = vector.shape_cast %253 : vector<2xf32> to vector<2x1xf32>
    %255 = vector.shape_cast %249 : vector<2x1xf32> to vector<2x1xf32>
    %256 = vector.broadcast %255 : vector<2x1xf32> to vector<2x16xf32>
    %257 = vector.shape_cast %254 : vector<2x1xf32> to vector<2x1xf32>
    %258 = vector.broadcast %257 : vector<2x1xf32> to vector<2x16xf32>
    %259 = arith.select %229, %256, %258 : vector<2x16xi1>, vector<2x16xf32>
    %260 = math.log %259 : vector<2x16xf32>
    %261 = arith.subf %244, %260 : vector<2x16xf32>
    %262 = arith.mulf %128, %261 : vector<2x16xf32>
    %263 = vector.shape_cast %262 : vector<2x16xf32> to vector<1x2x16xf32>
    %cst_97 = arith.constant dense<0.000000e+00> : vector<1xf32>
    %264 = vector.multi_reduction <add>, %263, %cst_97 [1, 2] : vector<1x2x16xf32> to vector<1xf32>
    %265 = vector.shape_cast %264 : vector<1xf32> to vector<1x1x1xf32>
    %266 = vector.extract %265[0, 0, 0] : f32 from vector<1x1x1xf32>
    %267 = vector.broadcast %266 : f32 to vector<1x1xf32>
    %268 = arith.negf %215 : vector<1x1xf32>
    %269 = math.exp %268 : vector<1x1xf32>
    %cst_98 = arith.constant 1.000000e+00 : f32
    %270 = vector.broadcast %cst_98 : f32 to vector<1x1xf32>
    %271 = arith.addf %270, %269 : vector<1x1xf32>
    %272 = arith.divf %270, %271 : vector<1x1xf32>
    %273 = arith.negf %223 : vector<1x1xf32>
    %274 = math.exp %273 : vector<1x1xf32>
    %cst_99 = arith.constant 1.000000e+00 : f32
    %275 = vector.broadcast %cst_99 : f32 to vector<1x1xf32>
    %276 = arith.addf %275, %274 : vector<1x1xf32>
    %277 = arith.divf %275, %276 : vector<1x1xf32>
    %278 = arith.addf %272, %277 : vector<1x1xf32>
    %279 = arith.negf %267 : vector<1x1xf32>
    %280 = math.exp %279 : vector<1x1xf32>
    %cst_100 = arith.constant 1.000000e+00 : f32
    %281 = vector.broadcast %cst_100 : f32 to vector<1x1xf32>
    %282 = arith.addf %281, %280 : vector<1x1xf32>
    %283 = arith.divf %281, %282 : vector<1x1xf32>
    %284 = arith.addf %278, %283 : vector<1x1xf32>
    %c362 = arith.constant 362 : index
    %c0_101 = arith.constant 0 : index
    %285 = vector.load %arg2[%c362, %c0_101] : memref<368x128xbf16, #tpu.memory_space<vmem>>, vector<2x128xbf16>
    %286 = arith.extf %285 : vector<2x128xbf16> to vector<2x128xf32>
    %cst_102 = arith.constant dense<0.000000e+00> : vector<1x128xf32>
    %287 = tpu.matmul %162, %286, %cst_102 {dimension_numbers = #tpu.dot_dimension_numbers<[1], [0], [0], [1], [0, 0, 1, 1], [], []>} : vector<1x2xf32>, vector<2x128xf32>, vector<1x128xf32> -> vector<1x128xf32>
    %288 = tpu.iota {dimensions = array<i32: 1>} : vector<1x128xi32>
    %c2_i32 = arith.constant 2 : i32
    %289 = vector.broadcast %c2_i32 : i32 to vector<1x128xi32>
    %290 = arith.cmpi slt, %288, %289 : vector<1x128xi32>
    %c357 = arith.constant 357 : index
    %c0_103 = arith.constant 0 : index
    %291 = vector.load %arg2[%c357, %c0_103] : memref<368x128xbf16, #tpu.memory_space<vmem>>, vector<1x1xbf16>
    %292 = arith.extf %291 : vector<1x1xbf16> to vector<1x1xf32>
    %cst_104 = arith.constant 0.000000e+00 : f32
    %293 = vector.shape_cast %292 : vector<1x1xf32> to vector<1x1xf32>
    %294 = vector.broadcast %293 : vector<1x1xf32> to vector<1x128xf32>
    %295 = vector.broadcast %cst_104 : f32 to vector<1x128xf32>
    %296 = arith.select %290, %294, %295 : vector<1x128xi1>, vector<1x128xf32>
    %297 = arith.addf %287, %296 : vector<1x128xf32>
    %c2_i32_105 = arith.constant 2 : i32
    %298 = vector.broadcast %c2_i32_105 : i32 to vector<1x128xi32>
    %299 = arith.cmpi eq, %288, %298 : vector<1x128xi32>
    %cst_106 = arith.constant 0.000000e+00 : f32
    %300 = vector.shape_cast %284 : vector<1x1xf32> to vector<1x1xf32>
    %301 = vector.broadcast %300 : vector<1x1xf32> to vector<1x128xf32>
    %302 = vector.broadcast %cst_106 : f32 to vector<1x128xf32>
    %303 = arith.select %299, %301, %302 : vector<1x128xi1>, vector<1x128xf32>
    %304 = arith.addf %297, %303 : vector<1x128xf32>
    %305 = tpu.iota {dimensions = array<i32: 0>} : vector<8x128xi32>
    %c0_i32 = arith.constant 0 : i32
    %306 = vector.broadcast %c0_i32 : i32 to vector<8x128xi32>
    %307 = arith.cmpi eq, %305, %306 : vector<8x128xi32>
    %cst_107 = arith.constant 0.000000e+00 : f32
    %308 = vector.shape_cast %304 : vector<1x128xf32> to vector<1x128xf32>
    %309 = vector.broadcast %308 : vector<1x128xf32> to vector<8x128xf32>
    %310 = vector.broadcast %cst_107 : f32 to vector<8x128xf32>
    %311 = arith.select %307, %309, %310 : vector<8x128xi1>, vector<8x128xf32>
    %c0_108 = arith.constant 0 : index
    %c0_109 = arith.constant 0 : index
    %312 = vector.load %arg3[%c0_108, %c0_109] : memref<8x128xf32, #tpu.memory_space<vmem>>, vector<8x128xf32>
    tpu.vector_store %arg3[%c0_108, %c0_109], %311 {strides = array<i32>} : memref<8x128xf32, #tpu.memory_space<vmem>>, vector<8x128xf32>,
    return
  }
}

</mosaic_0001>

<bundles_post_ra>
// kernel: tpu_custom_call.1
= control target key start
LH: loop header
LB: loop body
LE: loop exit
PB: predicated region body
PF: predicated region fallthrough
CT: control target
= control target key end

     0   :  { %8 = vsyncpa [#allocation3], 0  ;;  %s1331_s0 = inlined_call_operand.hbm [shape: bf16[8,64], index: 0, kind: input, shape index: {}]   ;;  %s1332_s1 = inlined_call_operand.hbm [shape: bf16[2,32], index: 1, kind: input, shape index: {}]   ;;  %s1333_s2 = inlined_call_operand.hbm [shape: bf16[368,128], index: 2, kind: input, shape index: {}]   ;;  %s1334_s3 = inlined_call_operand.hbm [shape: f32[8,128], index: 3, kind: output, shape index: {}]  }
   0x1   :  { %9 = vsyncpa [#allocation6], 0  ;;  %s27_s14 = sshll.u32 %s1332_s1, 4  ;;  %s28_s14 = int_to_ptr.hbm [resolvable:$true] %s27_s14 }
   0x2   :  { %10 = vsyncpa [#allocation4], 0  ;;  %s1113_s15 = smov [#allocation5]   ;;  %s16_s19 = sshll.u32 %s1331_s0, 4  ;;  %s17_s19 = int_to_ptr.hbm [resolvable:$true] %s16_s19 }
   0x3   :  { %s29_s16 = sshll.u32 %s1113_s15, 4  ;;  %s1114_s20 = smov [#allocation2]   ;;  %s30_s16 = int_to_ptr.vmem [resolvable:$true] %s29_s16 }
   0x4   :  { %32 = dma.hbm_to_vmem [thread:$0]  %s28_s14, 16, %s30_s16, [#allocation6]  }
   0x5   :  { %s18_s21 = sshll.u32 %s1114_s20, 4  ;;  %s37_s24 = sshll.u32 %s1333_s2, 4  ;;  %s19_s21 = int_to_ptr.vmem [resolvable:$true] %s18_s21  ;;  %s38_s24 = int_to_ptr.hbm [resolvable:$true] %s37_s24 }
   0x6   :  { %21 = dma.hbm_to_vmem [thread:$0]  %s17_s19, 64, %s19_s21, [#allocation3]  }
   0x7   :  { %s1115_s1 = smov [#allocation7]   ;;  %s1116_s26 = smov 64  }
   0x8   :  { %s39_s25 = sshll.u32 %s1115_s1, 4  ;;  %s1117_s27 = smov 4   ;;  %s40_s25 = int_to_ptr.vmem [resolvable:$true] %s39_s25 }
   0x9   :  { %45 = dma.hbm_to_vmem [thread:$0]  %s38_s24, 2944, %s40_s25, [#allocation6], %s1116_s26, %s1116_s26, %s1117_s27  }
   0xa   :  { %1107 = dma.done.wait [#allocation3], 64  }
   0xb   :  { %1108 = vsyncadd [#allocation3], 4294967232 }
   0xc   :  { %1109 = dma.done.wait [#allocation6], 2960  }
   0xd   :  { %1110 = vsyncadd [#allocation6], 4294964336  ;;  %vm65_vm0 = vcmask 1043456   ;;  %v60_v0 = vld [vmem:[#allocation2] sm:$0xf]  ;;  %vm61_vm1 = vcmask 64512   ;;  %v135_v12 = vlaneseq }
   0xe   :  { %v940_v1 = vld [vmem:[#allocation7 + $0x18] sm:$0xff]  ;;  %v67_v2 = vsel %vm65_vm0, %v60_v0, 0  ;;  %v59_v3 = vld [vmem:[#allocation7 + $0xb4] sm:$0x1]  ;;  %v938_v5 = vld [vmem:[#allocation7 + $0x8] sm:$0xff]  ;;  %vm118_vm2 = vcmask 523264  }
   0xf   :  { %76 = vmatpush.bf16.msra.mxu0 %v67_v2  ;;  %126 = vmatpush.bf16.msra.mxu1 %v940_v1  ;;  %v939_v4 = vld [vmem:[#allocation7 + $0x10] sm:$0xff]  ;;  %v937_v6 = vld [vmem:[#allocation7] sm:$0xff]  ;;  %v1160_v14 = vand.u32 127, %v135_v12  ;;  %vm139_vm4 = vcmask 517120   ;;  %vm1118_vm5 = vmmov 1   ;;  %v944_v33 = vld [vmem:[#allocation7 + $0x38] sm:$0xff] }
  0x10   :  { %v91_v10 = vld [vmem:[#allocation7 + $0xb0] sm:$0x1]  ;;  %204 = vmatpush.bf16.msra.mxu2 %v944_v33  ;;  %v942_v35 = vld [vmem:[#allocation7 + $0x28] sm:$0xff]  ;;  %v941_v36 = vld [vmem:[#allocation7 + $0x20] sm:$0xff]  ;;  %vm215_vm8 = vcmask 254976   ;;  %vm259_vm10 = vcmask 261120  }
  0x11   :  { %v92_v11 = vunpack.c.l.bf16 %v91_v10  ;;  %vm137_vm3 = vcmp.lt.s32.totalorder %v1160_v14, 32  ;;  %v943_v34 = vld [vmem:[#allocation7 + $0x30] sm:$0xff]  ;;  %vm213_vm7 = vcmp.lt.s32.totalorder %v1160_v14, 16  ;;  %v946_v61 = vld [vmem:[#allocation7 + $0x48] sm:$0xff]  ;;  %v945_v62 = vld [vmem:[#allocation7 + $0x40] sm:$0xff]  ;;  %vm276_vm11 = vcmp.lt.s32.totalorder %v1160_v14, 8 }
  0x12   :  { %830 = vmatmul.msk.bf16.vlgmr.msra.gmra.mxu0 %vm61_vm1, %v59_v3  ;;  %vm1169_vm6 = vmxor %vm137_vm3, %vm1118_vm5  ;;  %269 = vmatpush.bf16.msra.mxu3 %v946_v61  ;;  %vm278_vm13 = vcmask 123904   ;;  %v954_v33 = vld [vmem:[#allocation7 + $0x88] sm:$0xff]  ;;  %vm311_vm14 = vcmask 130048   ;;  %s1120_s29 = smov [#allocation8]   ;;  %s819_s6 = sshll.u32 %s1334_s3, 4  ;;  %s820_s6 = int_to_ptr.hbm [resolvable:$true] %s819_s6 }
  0x13   :  { %127 = vmatpush.bf16.msra.mxu1 %v939_v4  ;;  %v93_v13 = vperm.slane %v92_v11, 0  ;;  %v172_v43 = vperm.slane %v92_v11, 1  ;;  %vm219_vm9 = vmxor %vm213_vm7, %vm1118_vm5  ;;  %s817_s30 = sshll.u32 %s1120_s29, 4  ;;  %s818_s30 = int_to_ptr.vmem [resolvable:$true] %s817_s30 }
  0x14   :  { %205 = vmatpush.bf16.msra.mxu2 %v943_v34  ;;  %vm1213_vm12 = vmxor %vm276_vm11, %vm1118_vm5  ;;  %v953_v34 = vld [vmem:[#allocation7 + $0x80] sm:$0xff] }
  0x16   :  { %270 = vmatpush.bf16.msra.mxu3 %v945_v62 }
  0x17   :  { %128 = vmatpush.bf16.msra.mxu1 %v938_v5  ;;  %v1204_v5 = vld [vmem:[#allocation7 + $0xb0] sm:$0x2] }
  0x18   :  { %206 = vmatpush.bf16.msra.mxu2 %v942_v35 }
  0x1b   :  { %129 = vmatpush.bf16.msra.mxu1 %v937_v6  ;;  %v245_v6 = vunpack.c.l.bf16 %v1204_v5 }
  0x1c   :  { %207 = vmatpush.bf16.msra.mxu2 %v941_v36 }
  0x8f   :  { %v1151_v7 = vpop.f32.mrf.mxu0 }
  0x90   :  { %v1155_v8 = vpack.c.bf16 %v1151_v7, %v1151_v7 }
  0x92   :  { %847 = vmatmul.msk.bf16.vlgmr.msra.gmra.mxu1 %vm118_vm2, %v1155_v8 }
  0x97   :  { %v80_v9 = vpop.f32.mrf.mxu0 }
  0x98   :  { %v246_v9 = vperm.slane %v245_v6, 2 }
 0x10f   :  { %v131_v15 = vpop.f32.mrf.mxu1 }
 0x110   :  { %v132_v16 = vadd.f32 %v131_v15, %v93_v13 }
 0x112   :  { %v138_v17 = vsel %vm137_vm3, %v132_v16, -inf  ;;  %v144_v21 = vsel %vm1169_vm6, %v132_v16, -inf }
 0x113   :  { %v140_v18 = vsel %vm139_vm4, %v138_v17, -inf  ;;  %v145_v22 = vsel %vm139_vm4, %v144_v21, -inf }
 0x114   :  { %141 = vmax.xlane.f32.xlu0 %v140_v18 }
 0x117   :  { %v133_v19 = vpop.f32.mrf.mxu1 }
 0x11c   :  { %146 = vmax.xlane.f32.xlu0 %v145_v22 }
 0x187   :  { %v142_v23 = vpop.xlane.xlu0 %141 }
 0x18f   :  { %v147_v24 = vpop.xlane.xlu0 %146 }
 0x190   :  { %v148_v25 = vsel %vm137_vm3, %v142_v23, %v147_v24 }
 0x191   :  { %v149_v26 = vsub.f32 %v132_v16, %v148_v25 }
 0x193   :  { %v150_v27 = vmul.f32 1.442695, %v149_v26 }
 0x195   :  { %975 = vpow2.f32 %v150_v27 }
 0x19b   :  { %v976_v28 = vpop.eup %975 }
 0x19c   :  { %v152_v29 = vsel %vm137_vm3, %v976_v28, 0.0  ;;  %v156_v31 = vsel %vm1169_vm6, %v976_v28, 0.0 }
 0x19d   :  { %v153_v30 = vsel %vm139_vm4, %v152_v29, 0.0  ;;  %v157_v32 = vsel %vm139_vm4, %v156_v31, 0.0  ;;  %v947_v31 = vld [vmem:[#allocation7 + $0x50] sm:$0xff] }
 0x19e   :  { %154 = vadd.xlane.f32.xlu1 %v153_v30  ;;  %322 = vmatpush.bf16.msrb.mxu0 %v947_v31 }
 0x1a2   :  { %443 = vmatpush.bf16.msra.mxu0 %v954_v33 }
 0x1a6   :  { %158 = vadd.xlane.f32.xlu1 %v157_v32  ;;  %v948_v32 = vld [vmem:[#allocation7 + $0x58] sm:$0xff]  ;;  %444 = vmatpush.bf16.msra.mxu0 %v953_v34 }
 0x1a7   :  { %343 = vmatpush.bf16.msrb.mxu3 %v948_v32 }
 0x211   :  { %v155_v37 = vpop.xlane.xlu1 %154 }
 0x219   :  { %v159_v38 = vpop.xlane.xlu1 %158 }
 0x21a   :  { %v160_v39 = vsel %vm137_vm3, %v155_v37, %v159_v38 }
 0x21b   :  { %977 = vrcp.f32 %v160_v39 }
 0x221   :  { %v978_v40 = vpop.eup %977 }
 0x222   :  { %v162_v41 = vmul.f32 %v978_v40, %v976_v28 }
 0x224   :  { %v171_v42 = vpack.c.bf16 %v162_v41, %v162_v41  ;;  %v652_v41 = vsel %vm118_vm2, %v947_v31, 0 }
 0x226   :  { %864 = vmatmul.msk.bf16.vlgmr.msra.gmra.mxu2 %vm118_vm2, %v171_v42  ;;  %v349_v42 = vld [vmem:[#allocation5] sm:$0x1] }
 0x2a9   :  { %v209_v44 = vpop.f32.mrf.mxu2 }
 0x2aa   :  { %v210_v45 = vadd.f32 %v209_v44, %v172_v43  ;;  %v952_v43 = vld [vmem:[#allocation7 + $0x78] sm:$0xff]  ;;  %v950_v44 = vld [vmem:[#allocation7 + $0x68] sm:$0xff] }
 0x2ab   :  { %383 = vmatpush.bf16.msrb.mxu1 %v952_v43  ;;  %411 = vmatpush.bf16.msrb.mxu2 %v950_v44 }
 0x2ac   :  { %v214_v46 = vsel %vm213_vm7, %v210_v45, -inf  ;;  %v220_v49 = vsel %vm219_vm9, %v210_v45, -inf }
 0x2ad   :  { %v216_v47 = vsel %vm215_vm8, %v214_v46, -inf  ;;  %v221_v50 = vsel %vm215_vm8, %v220_v49, -inf  ;;  %v949_v46 = vld [vmem:[#allocation7 + $0x60] sm:$0xff] }
 0x2ae   :  { %217 = vmax.xlane.f32.xlu2 %v216_v47 }
 0x2af   :  { %412 = vmatpush.bf16.msrb.mxu2 %v949_v46 }
 0x2b1   :  { %v211_v48 = vpop.f32.mrf.mxu2 }
 0x2b6   :  { %222 = vmax.xlane.f32.xlu2 %v221_v50 }
 0x321   :  { %v218_v51 = vpop.xlane.xlu2 %217 }
 0x329   :  { %v223_v52 = vpop.xlane.xlu2 %222 }
 0x32a   :  { %v224_v53 = vsel %vm213_vm7, %v218_v51, %v223_v52  ;;  %v536_v51 = vmul.f32 %v1151_v7, %v1151_v7 }
 0x32b   :  { %v225_v54 = vsub.f32 %v210_v45, %v224_v53  ;;  %v951_v45 = vld [vmem:[#allocation7 + $0x70] sm:$0xff] }
 0x32c   :  { %384 = vmatpush.bf16.msrb.mxu1 %v951_v45 }
 0x32d   :  { %v226_v55 = vmul.f32 1.442695, %v225_v54 }
 0x32f   :  { %979 = vpow2.f32 %v226_v55 }
 0x335   :  { %v980_v56 = vpop.eup %979 }
 0x336   :  { %v232_v57 = vsel %vm219_vm9, %v980_v56, 0.0  ;;  %v228_v58 = vsel %vm213_vm7, %v980_v56, 0.0 }
 0x337   :  { %v233_v59 = vsel %vm215_vm8, %v232_v57, 0.0  ;;  %v229_v60 = vsel %vm215_vm8, %v228_v58, 0.0  ;;  %v593_v57 = vsel %vm1169_vm6, %v536_v51, 0.0 }
 0x338   :  { %234 = vadd.xlane.f32.xlu1 %v233_v59  ;;  %230 = vadd.xlane.f32.xlu0 %v229_v60  ;;  %v594_v58 = vsel %vm139_vm4, %v593_v57, 0.0 }
 0x3ab   :  { %v235_v63 = vpop.xlane.xlu1 %234  ;;  %v231_v0 = vpop.xlane.xlu0 %230 }
 0x3ac   :  { %v236_v1 = vsel %vm213_vm7, %v231_v0, %v235_v63 }
 0x3ad   :  { %981 = vrcp.f32 %v236_v1 }
 0x3b3   :  { %v982_v2 = vpop.eup %981 }
 0x3b4   :  { %v238_v3 = vmul.f32 %v982_v2, %v980_v56 }
 0x3b6   :  { %v243_v4 = vpack.c.bf16 %v238_v3, %v238_v3 }
 0x3b8   :  { %873 = vmatmul.msk.bf16.vlgmr.msra.gmra.mxu3 %vm259_vm10, %v243_v4 }
 0x43b   :  { %v272_v10 = vpop.f32.mrf.mxu3 }
 0x43c   :  { %v273_v13 = vadd.f32 %v272_v10, %v246_v9  ;;  %v557_v9 = vsel %vm137_vm3, %v536_v51, 0.0 }
 0x43e   :  { %v283_v15 = vsel %vm1213_vm12, %v273_v13, -inf  ;;  %v277_v16 = vsel %vm276_vm11, %v273_v13, -inf }
 0x43f   :  { %v284_v17 = vsel %vm278_vm13, %v283_v15, -inf  ;;  %v279_v18 = vsel %vm278_vm13, %v277_v16, -inf  ;;  %v558_v15 = vsel %vm139_vm4, %v557_v9, 0.0  ;;  %v505_v9 = vld [vmem:[#allocation7 + $0xb0] sm:$0x8] }
 0x440   :  { %285 = vmax.xlane.f32.xlu0 %v284_v17  ;;  %280 = vmax.xlane.f32.xlu2 %v279_v18  ;;  %v958_v17 = vld [vmem:[#allocation7 + $0xa8] sm:$0xff]  ;;  %v957_v18 = vld [vmem:[#allocation7 + $0xa0] sm:$0xff] }
 0x441   :  { %496 = vmatpush.bf16.msra.mxu3 %v958_v17 }
 0x443   :  { %v274_v19 = vpop.f32.mrf.mxu3 }
 0x444   :  { %v956_v19 = vld [vmem:[#allocation7 + $0x98] sm:$0xff] }
 0x445   :  { %497 = vmatpush.bf16.msra.mxu3 %v957_v18 }
 0x449   :  { %498 = vmatpush.bf16.msra.mxu3 %v956_v19 }
 0x4b3   :  { %v286_v21 = vpop.xlane.xlu0 %285  ;;  %v281_v22 = vpop.xlane.xlu2 %280 }
 0x4b4   :  { %v287_v23 = vsel %vm276_vm11, %v281_v22, %v286_v21  ;;  %v955_v21 = vld [vmem:[#allocation7 + $0x90] sm:$0xff] }
 0x4b5   :  { %v288_v24 = vsub.f32 %v273_v13, %v287_v23  ;;  %499 = vmatpush.bf16.msra.mxu3 %v955_v21  ;;  %v622_v22 = vld [vmem:[#allocation7 + $0x50] sm:$0xf] }
 0x4b6   :  { %v624_v23 = vsel %vm259_vm10, %v622_v22, 0 }
 0x4b7   :  { %v289_v25 = vmul.f32 1.442695, %v288_v24  ;;  %633 = vmatpush.bf16.xpose.msra.mxu2 %v624_v23 }
 0x4b9   :  { %983 = vpow2.f32 %v289_v25 }
 0x4bf   :  { %v984_v26 = vpop.eup %983 }
 0x4c0   :  { %v295_v27 = vsel %vm1213_vm12, %v984_v26, 0.0  ;;  %v291_v28 = vsel %vm276_vm11, %v984_v26, 0.0 }
 0x4c1   :  { %v296_v29 = vsel %vm278_vm13, %v295_v27, 0.0  ;;  %v292_v30 = vsel %vm278_vm13, %v291_v28, 0.0  ;;  %v451_v27 = vperm.slane %v245_v6, 3 }
 0x4c2   :  { %297 = vadd.xlane.f32.xlu2 %v296_v29  ;;  %293 = vadd.xlane.f32.xlu1 %v292_v30 }
 0x535   :  { %v298_v35 = vpop.xlane.xlu2 %297  ;;  %v294_v36 = vpop.xlane.xlu1 %293 }
 0x536   :  { %v299_v37 = vsel %vm276_vm11, %v294_v36, %v298_v35 }
 0x537   :  { %985 = vrcp.f32 %v299_v37 }
 0x53d   :  { %v986_v38 = vpop.eup %985 }
 0x53e   :  { %v1233_v39 = vmul.f32 %v986_v38, %v984_v26 }
 0x540   :  { %v304_v40 = vpack.c.bf16 %v1233_v39, %v1233_v39 }
 0x542   :  { %878 = vmatmul.msk.bf16.vlgmr.msrb.gmra.mxu0 %vm311_vm14, %v304_v40  ;;  %883 = vmatmul.msk.bf16.vlgmr.msrb.gmra.mxu3 %vm311_vm14, %v304_v40  ;;  %vm776_vm14 = vcmask 15360  }
 0x543   :  { %661 = vmatpush.bf16.xpose.msrb.mxu0 %v652_v41 }
 0x552   :  { %910 = vmatmul.msk.bf16.vlgmr.msra.gmra.mxu0 %vm259_vm10, %v349_v42 }
 0x562   :  { %931 = vmatmul.msk.bf16.vlgmr.msrb.gmra.mxu0 %vm118_vm2, %v1155_v8 }
 0x5bf   :  { %v324_v47 = vpop.f32.mrf.mxu0 }
 0x5c0   :  { %v535_v48 = vmul.f32 %v324_v47, %v324_v47  ;;  %v534_v59 = vmul.f32 %v324_v47, %v1151_v7 }
 0x5c2   :  { %v541_v49 = vsel %vm137_vm3, %v535_v48, 0.0  ;;  %v537_v62 = vsel %vm137_vm3, %v534_v59, 0.0  ;;  %v577_v10 = vsel %vm1169_vm6, %v535_v48, 0.0  ;;  %v573_v42 = vsel %vm1169_vm6, %v534_v59, 0.0 }
 0x5c3   :  { %v542_v50 = vsel %vm139_vm4, %v541_v49, 0.0  ;;  %v538_v63 = vsel %vm139_vm4, %v537_v62, 0.0  ;;  %v578_v16 = vsel %vm139_vm4, %v577_v10, 0.0  ;;  %v574_v43 = vsel %vm139_vm4, %v573_v42, 0.0  ;;  %v1294_v62 = vld [vmem:[#allocation7 + $0xb0] sm:$0x4] }
 0x5c4   :  { %543 = vadd.xlane.f32.xlu2 %v542_v50 }
 0x5c5   :  { %v345_v8 = vpop.f32.mrf.mxu3 }
 0x5c6   :  { %v350_v52 = vmul.f32 %v345_v8, %v324_v47  ;;  %v356_v53 = vsub.f32 %v324_v47, %v345_v8 }
 0x5c7   :  { %v326_v54 = vpop.f32.mrf.mxu0 }
 0x5c8   :  { %v355_v55 = vpack.c.bf16 %v350_v52, %v350_v52  ;;  %v361_v56 = vpack.c.bf16 %v356_v53, %v356_v53 }
 0x5ca   :  { %892 = vmatmul.msk.bf16.vlgmr.msrb.gmra.mxu1 %vm259_vm10, %v361_v56  ;;  %901 = vmatmul.msk.bf16.vlgmr.msrb.gmra.mxu2 %vm259_vm10, %v355_v55 }
 0x5cc   :  { %595 = vadd.xlane.f32.xlu2 %v594_v58 }
 0x5cd   :  { %v347_v60 = vpop.f32.mrf.mxu3 }
 0x5cf   :  { %v446_v61 = vpop.f32.mrf.mxu0 }
 0x5d4   :  { %539 = vadd.xlane.f32.xlu2 %v538_v63 }
 0x5d7   :  { %v448_v0 = vpop.f32.mrf.mxu0 }
 0x5da   :  { %930 = vmatmul.msk.bf16.vlgmr.msra.gmra.mxu2 %vm259_vm10, %v622_v22 }
 0x5df   :  { %v663_v1 = vpop.f32.mrf.mxu0 }
 0x5e0   :  { %v671_v2 = vsel %vm1213_vm12, %v663_v1, -inf  ;;  %v667_v3 = vsel %vm276_vm11, %v663_v1, -inf }
 0x5e1   :  { %v672_v4 = vsel %vm278_vm13, %v671_v2, -inf  ;;  %v668_v7 = vsel %vm278_vm13, %v667_v3, -inf  ;;  %v463_v3 = vunpack.c.l.bf16 %v1294_v62 }
 0x5e2   :  { %673 = vmax.xlane.f32.xlu1 %v672_v4  ;;  %669 = vmax.xlane.f32.xlu0 %v668_v7 }
 0x5e7   :  { %v665_v13 = vpop.f32.mrf.mxu0 }
 0x5ea   :  { %559 = vadd.xlane.f32.xlu1 %v558_v15  ;;  %579 = vadd.xlane.f32.xlu0 %v578_v16  ;;  %v464_v15 = vperm.slane %v463_v3, 4  ;;  %v506_v16 = vunpack.c.l.bf16 %v505_v9 }
 0x637   :  { %v544_v44 = vpop.xlane.xlu2 %543 }
 0x638   :  { %v545_v11 = vmax.f32 %v544_v44, 1e-16 }
 0x63f   :  { %v596_v47 = vpop.xlane.xlu2 %595 }
 0x640   :  { %v1286_v50 = vmax.f32 %v596_v47, 1e-16 }
 0x642   :  { %vm604_vm9 = vweird.f32 %v1286_v50 }
 0x647   :  { %v386_v24 = vpop.f32.mrf.mxu1 }
 0x64d   :  { %v414_v25 = vpop.f32.mrf.mxu2 }
 0x64e   :  { %v415_v26 = vadd.f32 %v414_v25, %v386_v24 }
 0x64f   :  { %v388_v28 = vpop.f32.mrf.mxu1 }
 0x650   :  { %v450_v29 = vadd.f32 %v446_v61, %v415_v26 }
 0x652   :  { %v452_v30 = vadd.f32 %v451_v27, %v450_v29  ;;  %v508_v27 = vrot.slane %v506_v16, 6 }
 0x654   :  { %v461_v31 = vpack.c.bf16 %v452_v30, %v452_v30 }
 0x655   :  { %v416_v32 = vpop.f32.mrf.mxu2  ;;  %v674_v33 = vpop.xlane.xlu1 %673 }
 0x656   :  { %v670_v34 = vpop.xlane.xlu0 %669  ;;  %927 = vmatmul.msk.bf16.vlgmr.msra.gmra.mxu3 %vm118_vm2, %v461_v31 }
 0x657   :  { %v675_v35 = vsel %vm276_vm11, %v670_v34, %v674_v33  ;;  %v540_v34 = vpop.xlane.xlu2 %539 }
 0x658   :  { %v1274_v36 = vsub.f32 %v663_v1, %v675_v35 }
 0x65a   :  { %v677_v37 = vmul.f32 1.442695, %v1274_v36 }
 0x65c   :  { %987 = vpow2.f32 %v677_v37 }
 0x65d   :  { %v560_v45 = vpop.xlane.xlu1 %559  ;;  %989 = vrsqrt.f32 %v545_v11  ;;  %v635_v51 = vpop.f32.mrf.mxu2 }
 0x65e   :  { %v580_v46 = vpop.xlane.xlu0 %579  ;;  %v561_v48 = vmax.f32 %v560_v45, 1e-16  ;;  %v639_v20 = vmul.f32 %v635_v51, %v635_v51 }
 0x65f   :  { %v581_v49 = vmax.f32 %v580_v46, 1e-16 }
 0x660   :  { %991 = vrsqrt.f32 %v561_v48  ;;  %v640_v52 = vsel %vm61_vm1, %v639_v20, 0.0  ;;  %vm552_vm1 = vweird.f32 %v545_v11  ;;  %vm568_vm4 = vweird.f32 %v561_v48 }
 0x661   :  { %993 = vrsqrt.f32 %v581_v49  ;;  %641 = vadd.xlane.f32.xlu2 %v640_v52  ;;  %vm588_vm6 = vweird.f32 %v581_v49  ;;  %v1119_v20 = vmov 0  }
 0x662   :  { %v988_v38 = vpop.eup %987  ;;  %995 = vrsqrt.f32 %v1286_v50  ;;  %973 = vset.pattern.permute.xlu1 %v1119_v20  ;;  %974 = vset.pattern.permute.xlu0 %v1119_v20 }
 0x663   :  { %v683_v5 = vsel %vm1213_vm12, %v988_v38, 0.0  ;;  %v679_v6 = vsel %vm276_vm11, %v988_v38, 0.0  ;;  %v990_v8 = vpop.eup %989  ;;  %vm780_vm12 = vcmask 1041408  }
 0x664   :  { %v684_v40 = vsel %vm278_vm13, %v683_v5, 0.0  ;;  %v680_v41 = vsel %vm278_vm13, %v679_v6, 0.0  ;;  %v547_v55 = vmul.f32 %v990_v8, %v545_v11  ;;  %vm553_vm15 = vweird.f32 %v990_v8 }
 0x665   :  { %685 = vadd.xlane.f32.xlu1 %v684_v40  ;;  %681 = vadd.xlane.f32.xlu0 %v680_v41  ;;  %v637_v59 = vpop.f32.mrf.mxu2  ;;  %vm554_vm3 = vmor %vm552_vm1, %vm553_vm15 }
 0x666   :  { %v1290_v53 = vpop.eup %991  ;;  %v548_v60 = vmul.f32 %v990_v8, %v547_v55 }
 0x667   :  { %v994_v54 = vpop.eup %993  ;;  %v563_v57 = vmul.f32 %v1290_v53, %v561_v48  ;;  %vm569_vm0 = vweird.f32 %v1290_v53 }
 0x668   :  { %v996_v56 = vpop.eup %995  ;;  %v583_v58 = vmul.f32 %v994_v54, %v581_v49  ;;  %v549_v1 = vmul.f32 0.5, %v548_v60  ;;  %vm589_vm2 = vweird.f32 %v994_v54  ;;  %vm1305_vm5 = vmor %vm568_vm4, %vm569_vm0  ;;  %v762_v49 = vld [vmem:[#allocation7 + $0xb4] sm:$0x2] }
 0x669   :  { %v599_v61 = vmul.f32 %v996_v56, %v1286_v50  ;;  %v564_v63 = vmul.f32 %v1290_v53, %v563_v57  ;;  %vm605_vm7 = vweird.f32 %v996_v56  ;;  %vm590_vm8 = vmor %vm588_vm6, %vm589_vm2  ;;  %v763_v50 = vunpack.c.l.bf16 %v762_v49 }
 0x66a   :  { %v584_v0 = vmul.f32 %v994_v54, %v583_v58  ;;  %v550_v13 = vsub.f32 1.5, %v549_v1 }
 0x66b   :  { %v600_v2 = vmul.f32 %v996_v56, %v599_v61  ;;  %v565_v4 = vmul.f32 0.5, %v564_v63  ;;  %v772_v51 = vrot.slane %v763_v50, 2 }
 0x66c   :  { %v585_v7 = vmul.f32 0.5, %v584_v0  ;;  %v551_v25 = vmul.f32 %v990_v8, %v550_v13 }
 0x66d   :  { %575 = vadd.xlane.f32.xlu0 %v574_v43  ;;  %v601_v10 = vmul.f32 0.5, %v600_v2  ;;  %v566_v17 = vsub.f32 1.5, %v565_v4 }
 0x66e   :  { %v586_v21 = vsub.f32 1.5, %v585_v7  ;;  %v555_v30 = vsel %vm554_vm3, %v990_v8, %v551_v25 }
 0x66f   :  { %v602_v24 = vsub.f32 1.5, %v601_v10  ;;  %v567_v29 = vmul.f32 %v1290_v53, %v566_v17  ;;  %v556_v5 = vmul.f32 %v555_v30, %v540_v34 }
 0x670   :  { %v587_v28 = vmul.f32 %v994_v54, %v586_v21 }
 0x671   :  { %v603_v32 = vmul.f32 %v996_v56, %v602_v24  ;;  %v571_v38 = vsel %vm1305_vm5, %v1290_v53, %v567_v29 }
 0x672   :  { %v591_v35 = vsel %vm590_vm8, %v994_v54, %v587_v28  ;;  %v572_v45 = vmul.f32 %v571_v38, %v556_v5 }
 0x6d8   :  { %v686_v18 = vpop.xlane.xlu1 %685  ;;  %v682_v19 = vpop.xlane.xlu0 %681 }
 0x6d9   :  { %v687_v22 = vsel %vm276_vm11, %v682_v19, %v686_v18  ;;  %v501_v23 = vpop.f32.mrf.mxu3  ;;  %vm606_vm11 = vmor %vm604_vm9, %vm605_vm7  ;;  %vm764_vm7 = vcmp.lt.s32.totalorder %v1160_v14, 2 }
 0x6da   :  { %997 = vlog2.f32 %v687_v22  ;;  %v502_v26 = vadd.f32 %v501_v23, %v464_v15  ;;  %v607_v42 = vsel %vm606_vm11, %v996_v56, %v603_v32 }
 0x6dc   :  { %928 = vmatpush.xpose.msk.msra.mxu1 %vm259_vm10, %v502_v26 }
 0x6df   :  { %929 = vmatmul.msk.f32.vlgmr.msra.gmra.mxu1 %vm259_vm10, %v508_v27  ;;  %vm610_vm10 = vcmask 1024  }
 0x6e0   :  { %v998_v33 = vpop.eup %997  ;;  %v576_v37 = vpop.xlane.xlu0 %575  ;;  %935 = vmatpush.msk.msrb.mxu1 %vm780_vm12, %v772_v51 }
 0x6e1   :  { %v689_v6 = vmul.f32 0.6931472, %v998_v33  ;;  %v592_v40 = vmul.f32 %v591_v35, %v576_v37  ;;  %v503_v41 = vpop.f32.mrf.mxu3 }
 0x6e3   :  { %v608_v43 = vmul.f32 %v607_v42, %v592_v40  ;;  %v690_v44 = vsub.f32 %v1274_v36, %v689_v6  ;;  %v642_v36 = vpop.xlane.xlu2 %641 }
 0x6e4   :  { %v643_v8 = vrot.slane %v642_v36, 4 }
 0x6e5   :  { %v691_v46 = vmul.f32 %v690_v44, %v1233_v39  ;;  %v609_v11 = vadd.f32 %v608_v43, %v572_v45 }
 0x6e6   :  { %v644_v39 = vadd.f32 %v643_v8, %v642_v36 }
 0x6e7   :  { %v692_v47 = vsel %vm278_vm13, %v691_v46, 0.0  ;;  %v611_v48 = vsel %vm610_vm10, %v609_v11, 0.0  ;;  %vm803_vm10 = vcmp.eq.s32.totalorder %v1160_v14, 2 }
 0x6e8   :  { %693 = vadd.xlane.f32.xlu0 %v692_v47  ;;  %612 = vadd.xlane.f32.xlu1 %v611_v48  ;;  %v645_v52 = vrot.slane %v644_v39, 2 }
 0x6ea   :  { %v646_v58 = vadd.f32 %v645_v52, %v644_v39 }
 0x6ec   :  { %v647_v0 = vrot.slane %v646_v58, 1 }
 0x6ee   :  { %v648_v4 = vadd.f32 %v647_v0, %v646_v58  ;;  %v807_v58 = vshrl.u32 %v135_v12, 7 }
 0x6f0   :  { %vm808_vm12 = vcmp.eq.s32.totalorder %v807_v58, 0 }
 0x701   :  { %767 = vperm.xlu1 %973, %v463_v3  }
 0x75b   :  { %v613_v53 = vpop.xlane.xlu1 %612  ;;  %v694_v54 = vpop.xlane.xlu0 %693 }
 0x75c   :  { %v614_v55 = vrot.slane %v613_v53, 4  ;;  %v695_v56 = vrot.slane %v694_v54, 4  ;;  %v531_v57 = vpop.f32.mrf.mxu1 }
 0x75d   :  { %936 = vmatmul.msk.f32.vlgmr.msrb.gmra.mxu1 %vm776_vm14, %v531_v57 }
 0x75e   :  { %v615_v59 = vadd.f32 %v614_v55, %v613_v53  ;;  %v696_v60 = vadd.f32 %v695_v56, %v694_v54 }
 0x760   :  { %v616_v61 = vrot.slane %v615_v59, 2  ;;  %v697_v63 = vrot.slane %v696_v60, 2 }
 0x762   :  { %v698_v1 = vadd.f32 %v697_v63, %v696_v60  ;;  %v617_v62 = vadd.f32 %v616_v61, %v615_v59 }
 0x764   :  { %v618_v2 = vrot.slane %v617_v62, 1  ;;  %v699_v3 = vrot.slane %v698_v1, 1 }
 0x766   :  { %v619_v7 = vadd.f32 %v618_v2, %v617_v62  ;;  %v700_v9 = vadd.f32 %v699_v3, %v698_v1 }
 0x768   :  { %959 = vpush %v619_v7 }
 0x769   :  { %961 = vpush %v648_v4 }
 0x76a   :  { %963 = vpush %v700_v9 }
 0x773   :  { %v768_v49 = vpop.permute.xlu1 %767 }
 0x774   :  { %v770_v8 = vsel %vm764_vm7, %v768_v49, 0.0 }
 0x775   :  { %v774_v54 = vrot.slane %v770_v8, 5 }
 0x799   :  { %s960_s0 = spop %959 }
 0x79a   :  { %s962_s2 = spop %961  ;;  %v621_v10 = vstv %s960_s0 }
 0x79b   :  { %v650_v13 = vstv %s962_s2  ;;  %v932_v15 = vmul.f32 -1.442695, %v621_v10  ;;  %s964_s28 = spop %963 }
 0x79c   :  { %v933_v16 = vmul.f32 -1.442695, %v650_v13  ;;  %v702_v17 = vstv %s964_s28 }
 0x79d   :  { %999 = vpow2.f32 %v932_v15  ;;  %v934_v18 = vmul.f32 -1.442695, %v702_v17 }
 0x79e   :  { %1001 = vpow2.f32 %v933_v16 }
 0x79f   :  { %1003 = vpow2.f32 %v934_v18 }
 0x7a3   :  { %v1000_v19 = vpop.eup %999 }
 0x7a4   :  { %v1002_v21 = vpop.eup %1001  ;;  %v706_v22 = vadd.f32 1.0, %v1000_v19 }
 0x7a5   :  { %v725_v23 = vadd.f32 1.0, %v1002_v21  ;;  %v1004_v24 = vpop.eup %1003 }
 0x7a6   :  { %1005 = vrcp.f32 %v706_v22  ;;  %v745_v25 = vadd.f32 1.0, %v1004_v24  ;;  %v718_v41 = vand.u32 2147483648, %v706_v22  ;;  %vm712_vm2 = vweird.f32 %v706_v22 }
 0x7a7   :  { %1007 = vrcp.f32 %v725_v23  ;;  %vm731_vm13 = vweird.f32 %v725_v23  ;;  %v737_v38 = vand.u32 2147483648, %v725_v23  ;;  %v735_v40 = vand.u32 2147483647, %v725_v23 }
 0x7a8   :  { %1009 = vrcp.f32 %v745_v25  ;;  %v716_v43 = vand.u32 2147483647, %v706_v22  ;;  %v719_v47 = vor.u32 1.1754944e-38, %v718_v41  ;;  %v757_v20 = vand.u32 2147483648, %v745_v25 }
 0x7a9   :  { %v738_v45 = vor.u32 1.1754944e-38, %v737_v38  ;;  %vm736_vm4 = vcmp.eq.f32.partialorder %v735_v40, 8.507059e+37  ;;  %vm751_vm8 = vweird.f32 %v745_v25  ;;  %v755_v36 = vand.u32 2147483647, %v745_v25 }
 0x7aa   :  { %vm717_vm5 = vcmp.eq.f32.partialorder %v716_v43, 8.507059e+37  ;;  %v758_v53 = vor.u32 1.1754944e-38, %v757_v20 }
 0x7ab   :  { %vm756_vm11 = vcmp.eq.f32.partialorder %v755_v36, 8.507059e+37 }
 0x7ac   :  { %v1006_v26 = vpop.eup %1005 }
 0x7ad   :  { %v1008_v27 = vpop.eup %1007  ;;  %v708_v28 = vmul.f32 %v1006_v26, %v706_v22  ;;  %vm713_vm0 = vweird.f32 %v1006_v26 }
 0x7ae   :  { %v727_v29 = vmul.f32 %v1008_v27, %v725_v23  ;;  %v1010_v30 = vpop.eup %1009  ;;  %vm732_vm15 = vweird.f32 %v1008_v27  ;;  %vm714_vm3 = vmor %vm712_vm2, %vm713_vm0 }
 0x7af   :  { %v709_v31 = vsub.f32 1.0, %v708_v28  ;;  %v747_v33 = vmul.f32 %v1010_v30, %v745_v25  ;;  %vm1319_vm1 = vmor %vm731_vm13, %vm732_vm15  ;;  %vm752_vm6 = vweird.f32 %v1010_v30 }
 0x7b0   :  { %v728_v32 = vsub.f32 1.0, %v727_v29  ;;  %vm753_vm9 = vmor %vm751_vm8, %vm752_vm6 }
 0x7b1   :  { %v710_v34 = vmul.f32 %v1006_v26, %v709_v31  ;;  %v748_v37 = vsub.f32 1.0, %v747_v33 }
 0x7b2   :  { %v729_v35 = vmul.f32 %v1008_v27, %v728_v32 }
 0x7b3   :  { %v711_v5 = vadd.f32 %v1006_v26, %v710_v34  ;;  %v749_v44 = vmul.f32 %v1010_v30, %v748_v37 }
 0x7b4   :  { %v730_v6 = vadd.f32 %v1008_v27, %v729_v35 }
 0x7b5   :  { %v715_v46 = vsel %vm714_vm3, %v1006_v26, %v711_v5  ;;  %v750_v48 = vadd.f32 %v1010_v30, %v749_v44 }
 0x7b6   :  { %v734_v11 = vsel %vm1319_vm1, %v1008_v27, %v730_v6  ;;  %v720_v50 = vsel %vm717_vm5, %v719_v47, %v715_v46 }
 0x7b7   :  { %v739_v51 = vsel %vm736_vm4, %v738_v45, %v734_v11  ;;  %v754_v52 = vsel %vm753_vm9, %v1010_v30, %v750_v48 }
 0x7b8   :  { %v741_v39 = vadd.f32 %v739_v51, %v720_v50  ;;  %v759_v55 = vsel %vm756_vm11, %v758_v53, %v754_v52 }
 0x7ba   :  { %v761_v56 = vadd.f32 %v759_v55, %v741_v39 }
 0x7bc   :  { %v804_v60 = vsel %vm803_vm10, %v761_v56, 0.0 }
 0x7da   :  { %v800_v57 = vpop.f32.mrf.mxu1 }
 0x7db   :  { %v801_v59 = vadd.f32 %v800_v57, %v774_v54 }
 0x7dd   :  { %v805_v61 = vadd.f32 %v804_v60, %v801_v59 }
 0x7df   :  { %v809_v63 = vperm.slane %v805_v61, 0 }
 0x7e1   :  { %v810_v0 = vsel %vm808_vm12, %v809_v63, 0.0 }
 0x7e2   :  { %811 = vst [vmem:[#allocation8] sm:$0xff] %v810_v0 }
 0x7e3   :  { %822 = dma.vmem_to_hbm [thread:$0]  %s818_s30, 128, %s820_s6, [#allocation4]  }
 0x7e4   :  { %1111 = dma.done.wait [#allocation4], 128  }
 0x7e5   :  { %1112 = vsyncadd [#allocation4], 4294967168 }
 0x7e6   :  { %827 = vsyncpa [#allocation3], 1 }
 0x7e7   :  { %828 = vsyncpa [#allocation6], 1 }
 0x7e8   :  { %829 = vsyncpa [#allocation4], 1 }

</bundles_post_ra>
